<compile_context>
chip_gen: v5e
topology: v5e:2x2
jax: 0.10.0
libtpu: 0.0.40
codegen_flags: <defaults>
</compile_context>

<pallas_src>
import numpy as np

import jax
import jax.numpy as jnp
from jax.experimental import pallas as pl
from jax.experimental.pallas import tpu as pltpu

_MAX_ROW_TILE = 1024  # 1024 rows * 128 lanes * 4 B = 512 KiB per block per operand


def _dropout_kernel(thresh_ref, scale_ref, x_ref, bits_ref, o_ref):
    """Inverted dropout on one (1, TB, D) block of one component.

    thresh_ref : SMEM (P,) int32   -- signed keep-threshold per component
    scale_ref  : SMEM (P,) float32 -- 1/(1-p) per component (0.0 when p == 1)
    x_ref      : VMEM (1, TB, D) input block
    bits_ref   : VMEM (1, TB, D) int32 uniform random bits
    o_ref      : VMEM (1, TB, D) output block
    """
    part = pl.program_id(0)
    thresh = thresh_ref[part]
    scale = scale_ref[part]
    x = x_ref[...]
    # P(bits >= thresh) == 1 - p : a single integer compare, no float uniforms.
    keep = bits_ref[...] >= thresh
    scaled = x * scale.astype(x.dtype)  # stay in input dtype (bf16-friendly on v6e/v7x)
    o_ref[...] = jnp.where(keep, scaled, jnp.zeros_like(scaled))


def _fused_dropout(x_all, bits, thresholds, scales):
    """One pallas_call applying per-component inverted dropout to (P, B, D)."""
    P, B, D = x_all.shape
    TB = B if B <= _MAX_ROW_TILE else _MAX_ROW_TILE
    grid = (P, pl.cdiv(B, TB))
    return pl.pallas_call(
        _dropout_kernel,
        out_shape=jax.ShapeDtypeStruct((P, B, D), x_all.dtype),
        grid_spec=pltpu.PrefetchScalarGridSpec(
            num_scalar_prefetch=2,
            grid=grid,
            in_specs=[
                pl.BlockSpec((1, TB, D), lambda p, r, thr, sc: (p, r, 0)),
                pl.BlockSpec((1, TB, D), lambda p, r, thr, sc: (p, r, 0)),
            ],
            out_specs=pl.BlockSpec((1, TB, D), lambda p, r, thr, sc: (p, r, 0)),
        ),
        compiler_params=pltpu.CompilerParams(
            dimension_semantics=("parallel", "parallel"),
        ),
    )(thresholds, scales, x_all, bits)


def mobius_dropout(complex_numbers, dropout_rate_list, key=None, training=True):
    """Pallas equivalent of MobiusDropout.forward.

    complex_numbers  : tuple of complex numbers; each is a tuple of component
                       tensors (e.g. (real, imag)), each of shape (B, D).
    dropout_rate_list: List[List[float]], one inner list per complex number,
                       one rate per component.
    """
    complex_numbers = tuple(tuple(cn) for cn in complex_numbers)
    if not training:
        return complex_numbers  # nn.Dropout is identity in eval mode

    parts, rates, sizes = [], [], []
    for idx, cn in enumerate(complex_numbers):
        sizes.append(len(cn))
        for pidx, part in enumerate(cn):
            parts.append(part)
            rates.append(float(dropout_rate_list[idx][pidx]))
    if not parts:
        return complex_numbers

    shape, dtype = parts[0].shape, parts[0].dtype
    assert all(p.shape == shape and p.dtype == dtype for p in parts), (
        "fused MobiusDropout kernel expects all component tensors to share shape/dtype")
    P = len(parts)
    B, D = shape
    x_all = jnp.stack(parts, axis=0)  # (P, B, D)

    if key is None:
        key = jax.random.PRNGKey(0)
    bits_u = jax.random.bits(key, (P, B, D), dtype=jnp.uint32)
    bits = jax.lax.bitcast_convert_type(bits_u, jnp.int32)  # uniform over int32 range

    # Precompute per-component keep-threshold (signed-int domain) and survivor scale.
    th, sc = [], []
    for r in rates:
        if r >= 1.0:
            th.append(2**31 - 1)  # keep-prob ~ 2^-32
            sc.append(0.0)        # dropout(p=1) -> all zeros (survivors scaled by 0)
        else:
            t = int(round(r * 2.0**32)) - 2**31
            th.append(max(-(2**31), min(t, 2**31 - 1)))
            sc.append(1.0 / (1.0 - r))
    thresholds = jnp.asarray(th, dtype=jnp.int32)
    scales = jnp.asarray(sc, dtype=jnp.float32)

    out_all = _fused_dropout(x_all, bits, thresholds, scales)

    out, k = [], 0
    for n in sizes:
        out.append(tuple(out_all[k + j] for j in range(n)))
        k += n
    return tuple(out)


if __name__ == "__main__":
    # MobiusDropout has no learnable weights; its "parameters" are the rates.
    dropout_rate_list = [[0.1, 0.2], [0.3, 0.4]]

    B, D = 8, 128  # batch=8 (sublane-aligned), hidden=128 (lane-aligned)
    key = jax.random.PRNGKey(0)
    k0, k1, k2, k3, kdrop = jax.random.split(key, 5)
    complex_numbers = (
        (jax.random.normal(k0, (B, D), jnp.float32),
         jax.random.normal(k1, (B, D), jnp.float32)),
        (jax.random.normal(k2, (B, D), jnp.float32),
         jax.random.normal(k3, (B, D), jnp.float32)),
    )

    out = mobius_dropout(complex_numbers, dropout_rate_list, key=kdrop, training=True)
    out = jax.block_until_ready(out)

    ok = True
    for idx, (cn_in, cn_out) in enumerate(zip(complex_numbers, out)):
        for pidx, (x, y) in enumerate(zip(cn_in, cn_out)):
            p = dropout_rate_list[idx][pidx]
            scale = 1.0 / (1.0 - p)
            x_np = np.asarray(jax.device_get(x))
            y_np = np.asarray(jax.device_get(y))
            if y_np.shape != x_np.shape or y_np.dtype != x_np.dtype:
                ok = False
            kept = y_np != 0.0  # (true zeros in x counted as dropped: benign test artifact)
            if kept.any() and not np.allclose(y_np[kept], x_np[kept] * scale,
                                              rtol=1e-5, atol=1e-5):
                ok = False
            drop_frac = 1.0 - float(kept.mean())
            if abs(drop_frac - p) > 0.15:  # loose statistical bound (>=10 sigma at B*D=1024)
                ok = False

    # Eval mode must be the identity.
    out_eval = mobius_dropout(complex_numbers, dropout_rate_list, training=False)
    for cn_in, cn_out in zip(complex_numbers, out_eval):
        for x, y in zip(cn_in, cn_out):
            if not np.array_equal(np.asarray(jax.device_get(x)),
                                  np.asarray(jax.device_get(y))):
                ok = False

    print("KERNEL_OK" if ok else "KERNEL_MISMATCH")
</pallas_src>

<mosaic_0001>
module attributes {stable_mosaic.version = 11 : i64} {
  func.func @_dropout_kernel(%arg0: i32, %arg1: i32, %arg2: memref<4xi32, #tpu.memory_space<smem>>, %arg3: memref<4xf32, #tpu.memory_space<smem>>, %arg4: memref<1x8x128xf32, #tpu.memory_space<vmem>>, %arg5: memref<1x8x128xi32, #tpu.memory_space<vmem>>, %arg6: memref<1x8x128xf32, #tpu.memory_space<vmem>>) attributes {dimension_semantics = [#tpu.dimension_semantics<parallel>, #tpu.dimension_semantics<parallel>], iteration_bounds = array<i64: 4, 1>, scalar_prefetch = 2 : i64, scratch_operands = 0 : i64, tpu.core_type = #tpu.core_type<tc>, window_params = [{transform_indices = @transform_0, window_bounds = array<i64: 1, 8, 128>}, {transform_indices = @transform_1, window_bounds = array<i64: 1, 8, 128>}, {transform_indices = @transform_2, window_bounds = array<i64: 1, 8, 128>}]} {
    %0 = arith.index_cast %arg0 : i32 to index
    %1 = memref.load %arg2[%0] : memref<4xi32, #tpu.memory_space<smem>>
    %2 = arith.index_cast %arg0 : i32 to index
    %3 = memref.load %arg3[%2] : memref<4xf32, #tpu.memory_space<smem>>
    %c0 = arith.constant 0 : index
    %c0_0 = arith.constant 0 : index
    %c0_1 = arith.constant 0 : index
    %4 = vector.load %arg4[%c0, %c0_0, %c0_1] : memref<1x8x128xf32, #tpu.memory_space<vmem>>, vector<1x8x128xf32>
    %c0_2 = arith.constant 0 : index
    %c0_3 = arith.constant 0 : index
    %c0_4 = arith.constant 0 : index
    %5 = vector.load %arg5[%c0_2, %c0_3, %c0_4] : memref<1x8x128xi32, #tpu.memory_space<vmem>>, vector<1x8x128xi32>
    %6 = vector.broadcast %1 : i32 to vector<1x8x128xi32>
    %7 = arith.cmpi sge, %5, %6 : vector<1x8x128xi32>
    %8 = vector.broadcast %3 : f32 to vector<1x8x128xf32>
    %9 = arith.mulf %4, %8 : vector<1x8x128xf32>
    %cst = arith.constant 0.000000e+00 : f32
    %10 = vector.broadcast %cst : f32 to vector<1x8x128xf32>
    %11 = arith.select %7, %9, %10 : vector<1x8x128xi1>, vector<1x8x128xf32>
    %c0_5 = arith.constant 0 : index
    %c0_6 = arith.constant 0 : index
    %c0_7 = arith.constant 0 : index
    %12 = vector.load %arg6[%c0_5, %c0_6, %c0_7] : memref<1x8x128xf32, #tpu.memory_space<vmem>>, vector<1x8x128xf32>
    tpu.vector_store %arg6[%c0_5, %c0_6, %c0_7], %11 {strides = array<i32>} : memref<1x8x128xf32, #tpu.memory_space<vmem>>, vector<1x8x128xf32>,
    return
  }
  func.func @transform_0(%arg0: i32, %arg1: i32, %arg2: memref<4xi32, #tpu.memory_space<smem>>, %arg3: memref<4xf32, #tpu.memory_space<smem>>) -> (i32, i32, i32) {
    %c0_i32 = arith.constant 0 : i32
    %c0_i32_0 = arith.constant 0 : i32
    return %arg0, %arg1, %c0_i32 : i32, i32, i32
  }
  func.func @transform_1(%arg0: i32, %arg1: i32, %arg2: memref<4xi32, #tpu.memory_space<smem>>, %arg3: memref<4xf32, #tpu.memory_space<smem>>) -> (i32, i32, i32) {
    %c0_i32 = arith.constant 0 : i32
    %c0_i32_0 = arith.constant 0 : i32
    return %arg0, %arg1, %c0_i32 : i32, i32, i32
  }
  func.func @transform_2(%arg0: i32, %arg1: i32, %arg2: memref<4xi32, #tpu.memory_space<smem>>, %arg3: memref<4xf32, #tpu.memory_space<smem>>) -> (i32, i32, i32) {
    %c0_i32 = arith.constant 0 : i32
    %c0_i32_0 = arith.constant 0 : i32
    return %arg0, %arg1, %c0_i32 : i32, i32, i32
  }
}

</mosaic_0001>

<bundles_post_ra>
// kernel: tpu_custom_call.1
= control target key start
LH: loop header
LB: loop body
LE: loop exit
PB: predicated region body
PF: predicated region fallthrough
CT: control target
= control target key end

     0   :  { %s625_s21 = smov [#allocation3]   ;;  %s626_s22 = smov [#allocation4]   ;;  %s786_s0 = inlined_call_operand.hbm [shape: s32[4], index: 0, kind: input, shape index: {}]   ;;  %s787_s2 = inlined_call_operand.hbm [shape: f32[4,8,128], index: 2, kind: input, shape index: {}]   ;;  %s788_s3 = inlined_call_operand.hbm [shape: s32[4,8,128], index: 3, kind: input, shape index: {}]   ;;  %s789_s4 = inlined_call_operand.hbm [shape: f32[4,8,128], index: 4, kind: output, shape index: {}]   ;;  %s790_s1 = inlined_call_operand.hbm [shape: f32[4], index: 1, kind: input, shape index: {}]  }
   0x1   :  { %s10_s17 = sshll.u32 %s786_s0, 4  ;;  %s15_s20 = sshll.u32 %s790_s1, 4  ;;  %s11_s17 = int_to_ptr.hbm [resolvable:$true] %s10_s17  ;;  %s16_s20 = int_to_ptr.hbm [resolvable:$true] %s15_s20 }
   0x2   :  { %13 = dma.hbm_to_smem %s11_s17, 16, %s625_s21, [#allocation2] }
   0x3   :  { %18 = dma.hbm_to_smem %s16_s20, 16, %s626_s22, [#allocation2] }
   0x4   :  { %587 = dma.done.wait [#allocation2], 32 }
   0x5   :  { %588 = vsyncadd [#allocation2], 4294967264 }
   0x6   :  { %21 = sfence }
   0x7   :  { %22 = vsyncpa [#allocation6], 0 }
   0x8   :  { %24 = vsyncpa [#allocation6 + $0x1], 0 }
   0x9   :  { %25 = vsyncpa [#allocation9], 0 }
   0xa   :  { %27 = vsyncpa [#allocation9 + $0x1], 0 }
   0xb   :  { %28 = vsyncpa [#allocation7], 0 }
   0xc   :  { %30 = vsyncpa [#allocation7 + $0x1], 0  ;;  %s658_s0 = smov 0   ;;  %s660_s23 = smov 0  }
   0xd   :  { %s662_s1 = smov 0   ;;  %s664_s24 = smov 0  }
   0xe   :  { %s666_s25 = smov 0   ;;  %s668_s26 = smov 0  }
   0xf LB: > { %s366_s27 = sadd.s32 4294967295, %s623_s26   ;;  %s367_s28 = sadd.s32 4294967294, %s623_s26   ;;  %s623_s26 = sphi %s668_s26, %s36_s26   ;;  %s619_s25 = sphi %s666_s25, %s799_s25   ;;  %s615_s24 = sphi %s664_s24, %s798_s24   ;;  %s611_s1 = sphi %s662_s1, %s797_s1   ;;  %s607_s23 = sphi %s660_s23, %s796_s23   ;;  %s603_s0 = sphi %s658_s0, %s795_s0  }
  0x10   : > { %s48_s29 = sadd.s32 1, %s619_s25  ;;  %s57_s30 = sadd.s32 1, %s611_s1 }
  0x11   : > { %p50_p0 = scmp.ge.s32.totalorder %s48_s29, 4  ;;  %p64_p1 = scmp.ne.s32.totalorder %s611_s1, %s607_s23 }
  0x12   : > { %p65_p2 = scmp.eq.s32.totalorder %s623_s26, 0  ;;  %p70_p3 = scmp.ne.s32.totalorder %s607_s23, %s603_s0 }
  0x13   : > { %s801_s29 = smov (%p50_p0, %s48_s29), 0  ;;  %p71_p5 = scmp.eq.s32.totalorder %s366_s27, 0 }
  0x14   : > { %p699_p4 = por %p65_p2, %p64_p1  ;;  %s52_s6 = ssub.s32 %s619_s25, %s801_s29 }
  0x15   : > { %p124_p6 = scmp.eq.s32.totalorder %s366_s27, 3  ;;  %p55_p7 = scmp.eq.s32.totalorder %s52_s6, 0 }
  0x16   : > { %p705_p8 = por %p71_p5, %p70_p3  ;;  %p130_p10 = scmp.eq.s32.totalorder %s367_s28, 3 }
  0x17   : > { %p709_p9 = por %p124_p6, %p64_p1  ;;  %p399_p12 = scmp.lt.s32.totalorder %s623_s26, 4 }
  0x18   : > { %s714_s9 = scalar_select %p55_p7, %s611_s1, %s57_s30  }
  0x19   : > { %p716_p11 = por %p130_p10, %p70_p3  ;;  %s150_s11 = sand.u32 1, %s611_s1  }
  0x1a   : > { %s370_s12 = sshll.u32 %s150_s11, 3  ;;  %s371_s13 = sshll.u32 %s619_s25, 3 }
  0x1b   : > { %s159_s16 = scalar_lea.hbm %s787_s2, %s371_s13  ;;  %s154_s17 = scalar_lea.vmem [#allocation5], %s370_s12 }
  0x1c   : > { %s163_s18 = sshll.u32 %s154_s17, 4  ;;  %s161_s19 = sshll.u32 %s159_s16, 4  ;;  %s164_s18 = int_to_ptr.vmem [resolvable:$true] %s163_s18  ;;  %s162_s19 = int_to_ptr.hbm [resolvable:$true] %s161_s19 }
  0x1d   : > { %p389_p13 = pnand %p399_p12, %p699_p4  ;;  %p374_p0 = scmp.ge.s32.totalorder %s623_s26, 1 }
  0x1e   : > { %p188_p1 = scmp.lt.s32.totalorder %s623_s26, 5  ;;  %s151_s20 = scalar_lea.sflag [#allocation6], %s150_s11 }
  0x1f   : > { %391 = dma.hbm_to_vmem [thread:$0]  (!%p389_p13), %s162_s19, 128, %s164_s18, %s151_s20  }
  0x20   : > { %p189_p2 = pnand %p374_p0, %p188_p1  ;;  %s179_s27 = scalar_lea.hbm %s788_s3, %s371_s13 }
  0x21   : > { %s174_s28 = scalar_lea.vmem [#allocation8], %s370_s12  ;;  %s181_s6 = sshll.u32 %s179_s27, 4  ;;  %s182_s6 = int_to_ptr.hbm [resolvable:$true] %s181_s6 }
  0x22   : > { %s183_s30 = sshll.u32 %s174_s28, 4  ;;  %s171_s14 = scalar_lea.sflag [#allocation9], %s150_s11  ;;  %s184_s30 = int_to_ptr.vmem [resolvable:$true] %s183_s30 }
  0x23   : > { %394 = dma.hbm_to_vmem [thread:$0]  (!%p389_p13), %s182_s6, 128, %s184_s30, %s171_s14  }
  0x24   : > { %192 = sbr.rel (%p189_p2) target bundleno = 60 (0x3c), region = 28  ;;  %s734_s5 = sand.u32 (!%p189_p2), 1, %s607_s23  }
  0x25   : > { %s375_s15 = sshll.u32 (!%p189_p2), %s734_s5, 3  ;;  %s195_s16 = scalar_lea.sflag (!%p189_p2), [#allocation6], %s734_s5 }
  0x26   : > { %s198_s17 = scalar_lea.vmem (!%p189_p2), [#allocation5], %s375_s15 }
  0x29   : > { %590 = dma.done.wait (%p705_p8), %s195_s16, 128  }
  0x2a   : > { %592 = vsyncadd (%p705_p8), %s195_s16, 4294967168  ;;  %s205_s12 = scalar_lea.sflag [#allocation9], %s734_s5  ;;  %s208_s11 = scalar_lea.vmem [#allocation8], %s375_s15 }
  0x2b   : > { %594 = dma.done.wait (%p705_p8), %s205_s12, 128  }
  0x2c   : > { %596 = vsyncadd (%p705_p8), %s205_s12, 4294967168  ;;  %s235_s13 = sld [smem:[#allocation3 + %s615_s24]]  ;;  %s379_s19 = sshll.u32 %s615_s24, 3  ;;  %v237_v0 = vld [vmem:[%s198_s17] sm:$0xff]  ;;  %v238_v1 = vld [vmem:[%s208_s11] sm:$0xff] }
  0x2d   : > { %s236_s18 = sld [smem:[#allocation4 + %s615_s24]]  ;;  %s257_s22 = scalar_lea.hbm %s789_s4, %s379_s19 }
  0x2e   : > { %s234_s27 = scalar_lea.vmem [#allocation10], %s375_s15  ;;  %s261_s30 = sshll.u32 %s257_s22, 4  ;;  %s262_s30 = int_to_ptr.hbm [resolvable:$true] %s261_s30 }
  0x2f   : > { %s259_s28 = sshll.u32 %s234_s27, 4  ;;  %s246_s7 = scalar_lea.sflag [#allocation7], %s734_s5  ;;  %s260_s28 = int_to_ptr.vmem [resolvable:$true] %s259_s28 }
  0x30   : > { %s549_s24 = sshra.s32 %s262_s30, 4  ;;  %s555_s15 = scalar_lea.hbm %s789_s4, 32  ;;  %s550_s24 = int_to_ptr.hbm [resolvable:$true] %s549_s24 }
  0x31   : > { %s551_s6 = scalar_lea.hbm %s550_s24, 8  ;;  %p556_p6 = scmp.lt.s32.totalorder %s550_s24, %s789_s4 }
  0x32   : > { %v239_v2 = vstv %s235_s13  ;;  %p552_p3 = scmp.ne.s32.totalorder %s550_s24, %s551_s6  ;;  %p557_p7 = scmp.lt.s32.totalorder %s555_s15, %s551_s6 }
  0x33   : > { %vm240_vm0 = vcmp.ge.s32.totalorder %v238_v1, %v239_v2  ;;  %v241_v3 = vstv %s236_s18 }
  0x34   : > { %v242_v4 = vmul.f32 %v241_v3, %v237_v0  ;;  %p553_p4 = pnand %p552_p3, %p709_p9  ;;  %p558_p8 = por %p557_p7, %p556_p6 }
  0x36   : > { %v243_v5 = vsel %vm240_vm0, %v242_v4, 0.0  ;;  %p554_p5 = pneg %p553_p4 }
  0x37   : > { %244 = vst [vmem:[%s234_s27] sm:$0xff] %v243_v5 }
  0x38   : > { %p559_p10 = pnand %p558_p8, %p554_p5 }
  0x3a   : > { %562 = shalt.err (!%p559_p10)
}
  0x3b   : > { %386 = dma.vmem_to_hbm [thread:$0]  (%p709_p9), %s260_s28, 128, %s262_s30, %s246_s7  }
  0x3c PF: > { %p400_p12 = scmp.ge.s32.totalorder %s623_s26, 2  ;;  %s273_s5 = sand.u32 1, %s603_s0  }
  0x3d   : > { %s274_s11 = scalar_lea.sflag [#allocation7], %s273_s5 }
  0x3e   : > { %p396_p13 = pnand %p400_p12, %p716_p11 }
  0x40   : > { %p397_p0 = pneg %p396_p13 }
  0x42   : > { %598 = dma.done.wait (%p397_p0), %s274_s11, 128  }
  0x43   : > { %600 = vsyncadd (%p397_p0), %s274_s11, 4294967168  ;;  %s36_s26 = sadd.s32 1, %s623_s26   ;;  %s795_s0 = smov %s607_s23 }
  0x44   : > { %p33_p1 = scmp.ge.s32.totalorder %s36_s26, 6   ;;  %s796_s23 = smov %s611_s1 }
  0x45   : > { %s797_s1 = smov %s714_s9  ;;  %s798_s24 = smov %s619_s25 }
  0x46   : > { %s799_s25 = smov %s801_s29  ;;  %35 = sbr.rel (!%p33_p1) target bundleno = 15 (0xf), region = 86 }
  0x4b   :  { %280 = vsyncpa [#allocation6], 1 }
  0x4c   :  { %282 = vsyncpa [#allocation6 + $0x1], 1 }
  0x4d   :  { %283 = vsyncpa [#allocation9], 1 }
  0x4e   :  { %285 = vsyncpa [#allocation9 + $0x1], 1 }
  0x4f   :  { %286 = vsyncpa [#allocation7], 1 }
  0x50   :  { %288 = vsyncpa [#allocation7 + $0x1], 1 }

</bundles_post_ra>
